<compile_context>
chip_gen: v6e
topology: v6e:2x2x1
jax: 0.10.0
libtpu: 0.0.40
codegen_flags: <defaults>
</compile_context>

<pallas_src>
import functools
import math

import jax
import jax.numpy as jnp
from jax.experimental import pallas as pl
from jax.experimental.pallas import tpu as pltpu

# ---- model hyper-params (small, consistent with the module) ----------------
D_MODEL = 32
NHEAD = 4
HEAD_DIM = D_MODEL // NHEAD
DIM_FF = 32          # must equal D_MODEL for the residual add in the mlp branch
USE_MLP = True
LN_EPS = 1e-5
E3 = 3 * D_MODEL     # fused q|k|v feature width


def encoder_layer_kernel(qkv_ref, w_ref, vec_ref, out_ref, *, nb, seq_len):
    """One grid step processes nb batch elements, folded into R = nb*S rows."""
    S, E, H, hd = seq_len, D_MODEL, NHEAD, HEAD_DIM
    R = nb * S

    xin = qkv_ref[...]                        # (R, 3E) = [src | k | v], native dtype

    # --- packed parameters ---------------------------------------------------
    w_in = w_ref[0]                           # (3E, 3E) block-diag(Wq^T, Wk^T, Wv^T)
    w_pg = w_ref[1]                           # (3E, 3E) page: [Wo^T | W1^T | 0]
    wo = w_pg[0:E, 0:E]                       # (E, E)
    w1 = w_pg[0:E, E:2 * E]                   # (E, E)

    vec = vec_ref[...].astype(jnp.float32)    # (4, 3E)
    b_in = vec[0:1, :]                        # (1, 3E) = [bq | bk | bv]
    bo  = vec[1:2, 0:E]
    b1  = vec[1:2, E:2 * E]
    g1  = vec[2:3, 0:E]
    be1 = vec[2:3, E:2 * E]
    g2  = vec[3:4, 0:E]
    be2 = vec[3:4, E:2 * E]

    # --- fused in-projection: one wide MXU matmul ----------------------------
    # q|k|v = [src|k|v] @ diag(Wq,Wk,Wv) + [bq|bk|bv]
    qkv = jnp.dot(xin, w_in, preferred_element_type=jnp.float32) + b_in   # (R, 3E) f32

    x = xin[:, 0:E].astype(jnp.float32)       # residual stream (the src rows)

    # leading-dim split (sublane-tile aligned for S == 8): (R, E) -> (nb, S, E)
    q3 = qkv[:, 0:E].reshape(nb, S, E)
    k3 = qkv[:, E:2 * E].reshape(nb, S, E)
    v3 = qkv[:, 2 * E:3 * E].reshape(nb, S, E)

    # --- per-head scaled dot-product attention, batched over nb --------------
    scale = 1.0 / math.sqrt(hd)
    head_outs = []
    for h in range(H):                        # static 4-iteration loop
        sl = slice(h * hd, (h + 1) * hd)
        qh, kh, vh = q3[:, :, sl], k3[:, :, sl], v3[:, :, sl]     # (nb, S, hd)
        s = jnp.einsum('bqd,bkd->bqk', qh, kh,
                       preferred_element_type=jnp.float32) * scale
        s = s - jnp.max(s, axis=-1, keepdims=True)
        p = jnp.exp(s)
        # exact reciprocal: EUP slot has plenty of slack, and it keeps softmax
        # rows summing to 1 to full f32 precision.
        p = p * pl.reciprocal(jnp.sum(p, axis=-1, keepdims=True), approx=False)
        head_outs.append(jnp.einsum('bqk,bkd->bqd', p, vh,
                                    preferred_element_type=jnp.float32))
    attn = jnp.concatenate(head_outs, axis=-1).reshape(R, E)       # (R, E)

    # --- output projection ----------------------------------------------------
    src2 = jnp.dot(attn, wo, preferred_element_type=jnp.float32) + bo

    # --- residual + LayerNorm1 (dropout1 identity in eval mode) ---------------
    y = x + src2
    mu = jnp.mean(y, axis=-1, keepdims=True)
    var = jnp.mean((y - mu) ** 2, axis=-1, keepdims=True)
    y = (y - mu) * jax.lax.rsqrt(var + LN_EPS) * g1 + be1

    if USE_MLP:
        # --- feed-forward (relu) + residual + LayerNorm2 (dropout2 identity) --
        ff = jnp.dot(y, w1, preferred_element_type=jnp.float32) + b1
        ff = jnp.maximum(ff, 0.0)
        z = y + ff
        mu2 = jnp.mean(z, axis=-1, keepdims=True)
        var2 = jnp.mean((z - mu2) ** 2, axis=-1, keepdims=True)
        z = (z - mu2) * jax.lax.rsqrt(var2 + LN_EPS) * g2 + be2
    else:
        z = y

    out_ref[...] = z.astype(out_ref.dtype)


def transformer_encoder_layer_qkv(src, k, v, params, *, target_rows=1024):
    B, S, E = src.shape
    assert E == D_MODEL
    assert DIM_FF == D_MODEL, "mlp branch requires dim_feedforward == d_model"

    # Rows per grid step: a multiple of S (each batch element's attention stays
    # inside one block) chosen near target_rows and dividing B exactly (no
    # padding).  Multiple steps -> pipelined DMA + natural megacore sharding.
    nb = max(1, min(B, max(1, target_rows // S)))
    while B % nb != 0:
        nb -= 1
    tile_r = nb * S
    num_steps = B // nb

    f32 = jnp.float32

    # Fused [src | k | v] row slab: one pipelined data operand instead of three.
    qkv_in = jnp.concatenate([src, k, v], axis=-1).reshape(B * S, 3 * E)

    # Weight slab (2, 3E, 3E):
    #   page 0 : block-diag(Wq^T, Wk^T, Wv^T)       (fused in-projection)
    #   page 1 : [Wo^T | W1^T | 0] in rows 0..E-1   (out-proj + ffn)
    w0 = jnp.zeros((3 * E, 3 * E), f32)
    w0 = w0.at[0:E, 0:E].set(params["wq_t"].astype(f32))
    w0 = w0.at[E:2 * E, E:2 * E].set(params["wk_t"].astype(f32))
    w0 = w0.at[2 * E:3 * E, 2 * E:3 * E].set(params["wv_t"].astype(f32))
    w1p = jnp.zeros((3 * E, 3 * E), f32)
    w1p = w1p.at[0:E, 0:E].set(params["wo_t"].astype(f32))
    w1p = w1p.at[0:E, E:2 * E].set(params["w1_t"].astype(f32))
    w_slab = jnp.stack([w0, w1p], axis=0)                             # (2, 3E, 3E)

    zrow = jnp.zeros((1, E), f32)
    vec_slab = jnp.concatenate([
        jnp.concatenate([params["bq"], params["bk"], params["bv"]], axis=-1),
        jnp.concatenate([params["bo"], params["b1"], zrow], axis=-1),
        jnp.concatenate([params["ln1_g"], params["ln1_b"], zrow], axis=-1),
        jnp.concatenate([params["ln2_g"], params["ln2_b"], zrow], axis=-1),
    ], axis=0).astype(f32)                                            # (4, 3E)

    kernel = functools.partial(encoder_layer_kernel, nb=nb, seq_len=S)

    out2d = pl.pallas_call(
        kernel,
        out_shape=jax.ShapeDtypeStruct((B * S, E), src.dtype),
        grid_spec=pltpu.PrefetchScalarGridSpec(
            num_scalar_prefetch=0,
            grid=(num_steps,),
            in_specs=[
                pl.BlockSpec((tile_r, 3 * E), lambda i: (i, 0)),      # fused rows
                pl.BlockSpec((2, 3 * E, 3 * E), lambda i: (0, 0, 0)), # weight slab
                pl.BlockSpec((4, 3 * E), lambda i: (0, 0)),           # bias/LN slab
            ],
            out_specs=pl.BlockSpec((tile_r, E), lambda i: (i, 0)),
        ),
        compiler_params=pltpu.CompilerParams(
            dimension_semantics=("parallel",)),
    )(qkv_in, w_slab, vec_slab)

    return out2d.reshape(B, S, E)


# ---------------- pure-JAX reference (mirrors PyTorch forward) ---------------
def reference(src, k, v, p):
    def ln(x, g, b):
        mu = jnp.mean(x, axis=-1, keepdims=True)
        var = jnp.mean((x - mu) ** 2, axis=-1, keepdims=True)
        return (x - mu) * jax.lax.rsqrt(var + LN_EPS) * g + b

    B, S, E = src.shape
    q = src @ p["wq_t"] + p["bq"]
    kk = k @ p["wk_t"] + p["bk"]
    vv = v @ p["wv_t"] + p["bv"]

    def split(x):  # (B,S,E) -> (B,H,S,hd)
        return x.reshape(B, S, NHEAD, HEAD_DIM).transpose(0, 2, 1, 3)

    qh, kh, vh = split(q), split(kk), split(vv)
    s = jnp.einsum("bhqd,bhkd->bhqk", qh, kh) / math.sqrt(HEAD_DIM)
    pw = jax.nn.softmax(s, axis=-1)
    o = jnp.einsum("bhqk,bhkd->bhqd", pw, vh)
    o = o.transpose(0, 2, 1, 3).reshape(B, S, E)
    src2 = o @ p["wo_t"] + p["bo"]
    y = ln(src + src2, p["ln1_g"], p["ln1_b"])
    if USE_MLP:
        ff = jnp.maximum(y @ p["w1_t"] + p["b1"], 0.0)
        y = ln(y + ff, p["ln2_g"], p["ln2_b"])
    return y


def make_params(key):
    ks = jax.random.split(key, 12)
    s = 0.1
    p = {
        "wq_t": jax.random.normal(ks[0], (D_MODEL, D_MODEL), jnp.float32) * s,
        "wk_t": jax.random.normal(ks[1], (D_MODEL, D_MODEL), jnp.float32) * s,
        "wv_t": jax.random.normal(ks[2], (D_MODEL, D_MODEL), jnp.float32) * s,
        "wo_t": jax.random.normal(ks[3], (D_MODEL, D_MODEL), jnp.float32) * s,
        "bq": jax.random.normal(ks[4], (1, D_MODEL), jnp.float32) * s,
        "bk": jax.random.normal(ks[5], (1, D_MODEL), jnp.float32) * s,
        "bv": jax.random.normal(ks[6], (1, D_MODEL), jnp.float32) * s,
        "bo": jax.random.normal(ks[7], (1, D_MODEL), jnp.float32) * s,
        "ln1_g": jnp.ones((1, D_MODEL), jnp.float32),
        "ln1_b": jnp.zeros((1, D_MODEL), jnp.float32),
        "w1_t": jax.random.normal(ks[8], (D_MODEL, DIM_FF), jnp.float32) * s,
        "b1": jax.random.normal(ks[9], (1, DIM_FF), jnp.float32) * s,
        "ln2_g": jnp.ones((1, D_MODEL), jnp.float32),
        "ln2_b": jnp.zeros((1, D_MODEL), jnp.float32),
    }
    return p


if __name__ == "__main__":
    key = jax.random.PRNGKey(0)
    k_src, k_k, k_v, k_p = jax.random.split(key, 4)

    B, S = 2, 8
    src = jax.random.normal(k_src, (B, S, D_MODEL), jnp.float32)
    kin = jax.random.normal(k_k, (B, S, D_MODEL), jnp.float32)
    vin = jax.random.normal(k_v, (B, S, D_MODEL), jnp.float32)
    params = make_params(k_p)

    out = transformer_encoder_layer_qkv(src, kin, vin, params)
    out = jax.block_until_ready(out)

    ref = reference(src, kin, vin, params)
    assert out.shape == (B, S, D_MODEL)
    # Exact softmax reciprocal -> only matmul-rounding differences remain.
    assert jnp.allclose(out, ref, atol=1e-3, rtol=1e-3), (
        f"max abs err {float(jnp.max(jnp.abs(out - ref)))}")

    print("KERNEL_OK")
</pallas_src>

<mosaic_0001>
module attributes {stable_mosaic.version = 11 : i64} {
  func.func @encoder_layer_kernel(%arg0: i32, %arg1: memref<16x96xf32, #tpu.memory_space<vmem>>, %arg2: memref<2x96x96xf32, #tpu.memory_space<vmem>>, %arg3: memref<4x96xf32, #tpu.memory_space<vmem>>, %arg4: memref<16x32xf32, #tpu.memory_space<vmem>>) attributes {dimension_semantics = [#tpu.dimension_semantics<parallel>], iteration_bounds = array<i64: 1>, scalar_prefetch = 0 : i64, scratch_operands = 0 : i64, tpu.core_type = #tpu.core_type<tc>, window_params = [{transform_indices = @transform_0, window_bounds = array<i64: 16, 96>}, {pipeline_mode = #tpu.pipeline_mode<synchronous>, transform_indices = @transform_1, window_bounds = array<i64: 2, 96, 96>}, {pipeline_mode = #tpu.pipeline_mode<synchronous>, transform_indices = @transform_2, window_bounds = array<i64: 4, 96>}, {transform_indices = @transform_3, window_bounds = array<i64: 16, 32>}]} {
    %c0 = arith.constant 0 : index
    %c0_0 = arith.constant 0 : index
    %0 = vector.load %arg1[%c0, %c0_0] : memref<16x96xf32, #tpu.memory_space<vmem>>, vector<16x96xf32>
    %c0_1 = arith.constant 0 : index
    %c0_2 = arith.constant 0 : index
    %c0_3 = arith.constant 0 : index
    %1 = vector.load %arg2[%c0_1, %c0_2, %c0_3] : memref<2x96x96xf32, #tpu.memory_space<vmem>>, vector<1x96x96xf32>
    %2 = vector.shape_cast %1 : vector<1x96x96xf32> to vector<96x96xf32>
    %c1 = arith.constant 1 : index
    %c0_4 = arith.constant 0 : index
    %c0_5 = arith.constant 0 : index
    %3 = vector.load %arg2[%c1, %c0_4, %c0_5] : memref<2x96x96xf32, #tpu.memory_space<vmem>>, vector<1x96x96xf32>
    %4 = vector.shape_cast %3 : vector<1x96x96xf32> to vector<96x96xf32>
    %5 = vector.extract_strided_slice %4 {offsets = [0, 0], sizes = [32, 32], strides = [1, 1]} : vector<96x96xf32> to vector<32x32xf32>
    %6 = vector.extract_strided_slice %4 {offsets = [0, 32], sizes = [32, 32], strides = [1, 1]} : vector<96x96xf32> to vector<32x32xf32>
    %c0_6 = arith.constant 0 : index
    %c0_7 = arith.constant 0 : index
    %7 = vector.load %arg3[%c0_6, %c0_7] : memref<4x96xf32, #tpu.memory_space<vmem>>, vector<4x96xf32>
    %8 = vector.extract_strided_slice %7 {offsets = [0, 0], sizes = [1, 96], strides = [1, 1]} : vector<4x96xf32> to vector<1x96xf32>
    %9 = vector.extract_strided_slice %7 {offsets = [1, 0], sizes = [1, 32], strides = [1, 1]} : vector<4x96xf32> to vector<1x32xf32>
    %10 = vector.extract_strided_slice %7 {offsets = [1, 32], sizes = [1, 32], strides = [1, 1]} : vector<4x96xf32> to vector<1x32xf32>
    %11 = vector.extract_strided_slice %7 {offsets = [2, 0], sizes = [1, 32], strides = [1, 1]} : vector<4x96xf32> to vector<1x32xf32>
    %12 = vector.extract_strided_slice %7 {offsets = [2, 32], sizes = [1, 32], strides = [1, 1]} : vector<4x96xf32> to vector<1x32xf32>
    %13 = vector.extract_strided_slice %7 {offsets = [3, 0], sizes = [1, 32], strides = [1, 1]} : vector<4x96xf32> to vector<1x32xf32>
    %14 = vector.extract_strided_slice %7 {offsets = [3, 32], sizes = [1, 32], strides = [1, 1]} : vector<4x96xf32> to vector<1x32xf32>
    %cst = arith.constant dense<0.000000e+00> : vector<16x96xf32>
    %15 = tpu.matmul %0, %2, %cst {dimension_numbers = #tpu.dot_dimension_numbers<[1], [0], [0], [1], [0, 0, 1, 1], [], []>} : vector<16x96xf32>, vector<96x96xf32>, vector<16x96xf32> -> vector<16x96xf32>
    %16 = vector.broadcast %8 : vector<1x96xf32> to vector<16x96xf32>
    %17 = arith.addf %15, %16 : vector<16x96xf32>
    %18 = vector.extract_strided_slice %0 {offsets = [0, 0], sizes = [16, 32], strides = [1, 1]} : vector<16x96xf32> to vector<16x32xf32>
    %19 = vector.extract_strided_slice %17 {offsets = [0, 0], sizes = [16, 32], strides = [1, 1]} : vector<16x96xf32> to vector<16x32xf32>
    %20 = vector.shape_cast %19 : vector<16x32xf32> to vector<2x8x32xf32>
    %21 = vector.extract_strided_slice %17 {offsets = [0, 32], sizes = [16, 32], strides = [1, 1]} : vector<16x96xf32> to vector<16x32xf32>
    %22 = vector.shape_cast %21 : vector<16x32xf32> to vector<2x8x32xf32>
    %23 = vector.extract_strided_slice %17 {offsets = [0, 64], sizes = [16, 32], strides = [1, 1]} : vector<16x96xf32> to vector<16x32xf32>
    %24 = vector.shape_cast %23 : vector<16x32xf32> to vector<2x8x32xf32>
    %25 = vector.extract_strided_slice %20 {offsets = [0, 0, 0], sizes = [2, 8, 8], strides = [1, 1, 1]} : vector<2x8x32xf32> to vector<2x8x8xf32>
    %26 = vector.extract_strided_slice %22 {offsets = [0, 0, 0], sizes = [2, 8, 8], strides = [1, 1, 1]} : vector<2x8x32xf32> to vector<2x8x8xf32>
    %27 = vector.extract_strided_slice %24 {offsets = [0, 0, 0], sizes = [2, 8, 8], strides = [1, 1, 1]} : vector<2x8x32xf32> to vector<2x8x8xf32>
    "tpu.trace_start"() <{level = 10 : i32, message = "bqd,bkd->bqk"}> : () -> ()
    %cst_8 = arith.constant dense<0.000000e+00> : vector<2x8x8xf32>
    %28 = tpu.matmul %25, %26, %cst_8 {dimension_numbers = #tpu.dot_dimension_numbers<[2], [2], [1], [1], [0, 0, 0, 1, 1, 1], [0], [0]>} : vector<2x8x8xf32>, vector<2x8x8xf32>, vector<2x8x8xf32> -> vector<2x8x8xf32>
    "tpu.trace_stop"() : () -> ()
    %cst_9 = arith.constant 0.353553385 : f32
    %29 = vector.broadcast %cst_9 : f32 to vector<2x8x8xf32>
    %30 = arith.mulf %28, %29 : vector<2x8x8xf32>
    %cst_10 = arith.constant dense<0xFF800000> : vector<2x8xf32>
    %31 = vector.multi_reduction <maximumf>, %30, %cst_10 [2] : vector<2x8x8xf32> to vector<2x8xf32>
    %32 = vector.shape_cast %31 : vector<2x8xf32> to vector<2x8x1xf32>
    %33 = vector.broadcast %32 : vector<2x8x1xf32> to vector<2x8x8xf32>
    %34 = arith.subf %30, %33 : vector<2x8x8xf32>
    %35 = math.exp %34 : vector<2x8x8xf32>
    %cst_11 = arith.constant dense<0.000000e+00> : vector<2x8xf32>
    %36 = vector.multi_reduction <add>, %35, %cst_11 [2] : vector<2x8x8xf32> to vector<2x8xf32>
    %37 = vector.shape_cast %36 : vector<2x8xf32> to vector<2x8x1xf32>
    %38 = tpu.reciprocal %37 : vector<2x8x1xf32> -> vector<2x8x1xf32>
    %39 = vector.broadcast %38 : vector<2x8x1xf32> to vector<2x8x8xf32>
    %40 = arith.mulf %35, %39 : vector<2x8x8xf32>
    "tpu.trace_start"() <{level = 10 : i32, message = "bqk,bkd->bqd"}> : () -> ()
    %cst_12 = arith.constant dense<0.000000e+00> : vector<2x8x8xf32>
    %41 = tpu.matmul %40, %27, %cst_12 {dimension_numbers = #tpu.dot_dimension_numbers<[2], [1], [1], [2], [0, 0, 0, 1, 1, 2], [0], [0]>} : vector<2x8x8xf32>, vector<2x8x8xf32>, vector<2x8x8xf32> -> vector<2x8x8xf32>
    "tpu.trace_stop"() : () -> ()
    %42 = vector.extract_strided_slice %20 {offsets = [0, 0, 8], sizes = [2, 8, 8], strides = [1, 1, 1]} : vector<2x8x32xf32> to vector<2x8x8xf32>
    %43 = vector.extract_strided_slice %22 {offsets = [0, 0, 8], sizes = [2, 8, 8], strides = [1, 1, 1]} : vector<2x8x32xf32> to vector<2x8x8xf32>
    %44 = vector.extract_strided_slice %24 {offsets = [0, 0, 8], sizes = [2, 8, 8], strides = [1, 1, 1]} : vector<2x8x32xf32> to vector<2x8x8xf32>
    "tpu.trace_start"() <{level = 10 : i32, message = "bqd,bkd->bqk"}> : () -> ()
    %cst_13 = arith.constant dense<0.000000e+00> : vector<2x8x8xf32>
    %45 = tpu.matmul %42, %43, %cst_13 {dimension_numbers = #tpu.dot_dimension_numbers<[2], [2], [1], [1], [0, 0, 0, 1, 1, 1], [0], [0]>} : vector<2x8x8xf32>, vector<2x8x8xf32>, vector<2x8x8xf32> -> vector<2x8x8xf32>
    "tpu.trace_stop"() : () -> ()
    %cst_14 = arith.constant 0.353553385 : f32
    %46 = vector.broadcast %cst_14 : f32 to vector<2x8x8xf32>
    %47 = arith.mulf %45, %46 : vector<2x8x8xf32>
    %cst_15 = arith.constant dense<0xFF800000> : vector<2x8xf32>
    %48 = vector.multi_reduction <maximumf>, %47, %cst_15 [2] : vector<2x8x8xf32> to vector<2x8xf32>
    %49 = vector.shape_cast %48 : vector<2x8xf32> to vector<2x8x1xf32>
    %50 = vector.broadcast %49 : vector<2x8x1xf32> to vector<2x8x8xf32>
    %51 = arith.subf %47, %50 : vector<2x8x8xf32>
    %52 = math.exp %51 : vector<2x8x8xf32>
    %cst_16 = arith.constant dense<0.000000e+00> : vector<2x8xf32>
    %53 = vector.multi_reduction <add>, %52, %cst_16 [2] : vector<2x8x8xf32> to vector<2x8xf32>
    %54 = vector.shape_cast %53 : vector<2x8xf32> to vector<2x8x1xf32>
    %55 = tpu.reciprocal %54 : vector<2x8x1xf32> -> vector<2x8x1xf32>
    %56 = vector.broadcast %55 : vector<2x8x1xf32> to vector<2x8x8xf32>
    %57 = arith.mulf %52, %56 : vector<2x8x8xf32>
    "tpu.trace_start"() <{level = 10 : i32, message = "bqk,bkd->bqd"}> : () -> ()
    %cst_17 = arith.constant dense<0.000000e+00> : vector<2x8x8xf32>
    %58 = tpu.matmul %57, %44, %cst_17 {dimension_numbers = #tpu.dot_dimension_numbers<[2], [1], [1], [2], [0, 0, 0, 1, 1, 2], [0], [0]>} : vector<2x8x8xf32>, vector<2x8x8xf32>, vector<2x8x8xf32> -> vector<2x8x8xf32>
    "tpu.trace_stop"() : () -> ()
    %59 = vector.extract_strided_slice %20 {offsets = [0, 0, 16], sizes = [2, 8, 8], strides = [1, 1, 1]} : vector<2x8x32xf32> to vector<2x8x8xf32>
    %60 = vector.extract_strided_slice %22 {offsets = [0, 0, 16], sizes = [2, 8, 8], strides = [1, 1, 1]} : vector<2x8x32xf32> to vector<2x8x8xf32>
    %61 = vector.extract_strided_slice %24 {offsets = [0, 0, 16], sizes = [2, 8, 8], strides = [1, 1, 1]} : vector<2x8x32xf32> to vector<2x8x8xf32>
    "tpu.trace_start"() <{level = 10 : i32, message = "bqd,bkd->bqk"}> : () -> ()
    %cst_18 = arith.constant dense<0.000000e+00> : vector<2x8x8xf32>
    %62 = tpu.matmul %59, %60, %cst_18 {dimension_numbers = #tpu.dot_dimension_numbers<[2], [2], [1], [1], [0, 0, 0, 1, 1, 1], [0], [0]>} : vector<2x8x8xf32>, vector<2x8x8xf32>, vector<2x8x8xf32> -> vector<2x8x8xf32>
    "tpu.trace_stop"() : () -> ()
    %cst_19 = arith.constant 0.353553385 : f32
    %63 = vector.broadcast %cst_19 : f32 to vector<2x8x8xf32>
    %64 = arith.mulf %62, %63 : vector<2x8x8xf32>
    %cst_20 = arith.constant dense<0xFF800000> : vector<2x8xf32>
    %65 = vector.multi_reduction <maximumf>, %64, %cst_20 [2] : vector<2x8x8xf32> to vector<2x8xf32>
    %66 = vector.shape_cast %65 : vector<2x8xf32> to vector<2x8x1xf32>
    %67 = vector.broadcast %66 : vector<2x8x1xf32> to vector<2x8x8xf32>
    %68 = arith.subf %64, %67 : vector<2x8x8xf32>
    %69 = math.exp %68 : vector<2x8x8xf32>
    %cst_21 = arith.constant dense<0.000000e+00> : vector<2x8xf32>
    %70 = vector.multi_reduction <add>, %69, %cst_21 [2] : vector<2x8x8xf32> to vector<2x8xf32>
    %71 = vector.shape_cast %70 : vector<2x8xf32> to vector<2x8x1xf32>
    %72 = tpu.reciprocal %71 : vector<2x8x1xf32> -> vector<2x8x1xf32>
    %73 = vector.broadcast %72 : vector<2x8x1xf32> to vector<2x8x8xf32>
    %74 = arith.mulf %69, %73 : vector<2x8x8xf32>
    "tpu.trace_start"() <{level = 10 : i32, message = "bqk,bkd->bqd"}> : () -> ()
    %cst_22 = arith.constant dense<0.000000e+00> : vector<2x8x8xf32>
    %75 = tpu.matmul %74, %61, %cst_22 {dimension_numbers = #tpu.dot_dimension_numbers<[2], [1], [1], [2], [0, 0, 0, 1, 1, 2], [0], [0]>} : vector<2x8x8xf32>, vector<2x8x8xf32>, vector<2x8x8xf32> -> vector<2x8x8xf32>
    "tpu.trace_stop"() : () -> ()
    %76 = vector.extract_strided_slice %20 {offsets = [0, 0, 24], sizes = [2, 8, 8], strides = [1, 1, 1]} : vector<2x8x32xf32> to vector<2x8x8xf32>
    %77 = vector.extract_strided_slice %22 {offsets = [0, 0, 24], sizes = [2, 8, 8], strides = [1, 1, 1]} : vector<2x8x32xf32> to vector<2x8x8xf32>
    %78 = vector.extract_strided_slice %24 {offsets = [0, 0, 24], sizes = [2, 8, 8], strides = [1, 1, 1]} : vector<2x8x32xf32> to vector<2x8x8xf32>
    "tpu.trace_start"() <{level = 10 : i32, message = "bqd,bkd->bqk"}> : () -> ()
    %cst_23 = arith.constant dense<0.000000e+00> : vector<2x8x8xf32>
    %79 = tpu.matmul %76, %77, %cst_23 {dimension_numbers = #tpu.dot_dimension_numbers<[2], [2], [1], [1], [0, 0, 0, 1, 1, 1], [0], [0]>} : vector<2x8x8xf32>, vector<2x8x8xf32>, vector<2x8x8xf32> -> vector<2x8x8xf32>
    "tpu.trace_stop"() : () -> ()
    %cst_24 = arith.constant 0.353553385 : f32
    %80 = vector.broadcast %cst_24 : f32 to vector<2x8x8xf32>
    %81 = arith.mulf %79, %80 : vector<2x8x8xf32>
    %cst_25 = arith.constant dense<0xFF800000> : vector<2x8xf32>
    %82 = vector.multi_reduction <maximumf>, %81, %cst_25 [2] : vector<2x8x8xf32> to vector<2x8xf32>
    %83 = vector.shape_cast %82 : vector<2x8xf32> to vector<2x8x1xf32>
    %84 = vector.broadcast %83 : vector<2x8x1xf32> to vector<2x8x8xf32>
    %85 = arith.subf %81, %84 : vector<2x8x8xf32>
    %86 = math.exp %85 : vector<2x8x8xf32>
    %cst_26 = arith.constant dense<0.000000e+00> : vector<2x8xf32>
    %87 = vector.multi_reduction <add>, %86, %cst_26 [2] : vector<2x8x8xf32> to vector<2x8xf32>
    %88 = vector.shape_cast %87 : vector<2x8xf32> to vector<2x8x1xf32>
    %89 = tpu.reciprocal %88 : vector<2x8x1xf32> -> vector<2x8x1xf32>
    %90 = vector.broadcast %89 : vector<2x8x1xf32> to vector<2x8x8xf32>
    %91 = arith.mulf %86, %90 : vector<2x8x8xf32>
    "tpu.trace_start"() <{level = 10 : i32, message = "bqk,bkd->bqd"}> : () -> ()
    %cst_27 = arith.constant dense<0.000000e+00> : vector<2x8x8xf32>
    %92 = tpu.matmul %91, %78, %cst_27 {dimension_numbers = #tpu.dot_dimension_numbers<[2], [1], [1], [2], [0, 0, 0, 1, 1, 2], [0], [0]>} : vector<2x8x8xf32>, vector<2x8x8xf32>, vector<2x8x8xf32> -> vector<2x8x8xf32>
    "tpu.trace_stop"() : () -> ()
    %93 = tpu.concatenate %41, %58, %75, %92 in 2 : vector<2x8x8xf32>, vector<2x8x8xf32>, vector<2x8x8xf32>, vector<2x8x8xf32> -> vector<2x8x32xf32>
    %94 = vector.shape_cast %93 : vector<2x8x32xf32> to vector<16x32xf32>
    %cst_28 = arith.constant dense<0.000000e+00> : vector<16x32xf32>
    %95 = tpu.matmul %94, %5, %cst_28 {dimension_numbers = #tpu.dot_dimension_numbers<[1], [0], [0], [1], [0, 0, 1, 1], [], []>} : vector<16x32xf32>, vector<32x32xf32>, vector<16x32xf32> -> vector<16x32xf32>
    %96 = vector.broadcast %9 : vector<1x32xf32> to vector<16x32xf32>
    %97 = arith.addf %95, %96 : vector<16x32xf32>
    %98 = arith.addf %18, %97 : vector<16x32xf32>
    %cst_29 = arith.constant dense<0.000000e+00> : vector<16xf32>
    %99 = vector.multi_reduction <add>, %98, %cst_29 [1] : vector<16x32xf32> to vector<16xf32>
    %100 = vector.shape_cast %99 : vector<16xf32> to vector<16x1xf32>
    %cst_30 = arith.constant 3.200000e+01 : f32
    %101 = vector.broadcast %cst_30 : f32 to vector<16x1xf32>
    %102 = arith.divf %100, %101 : vector<16x1xf32>
    %103 = vector.broadcast %102 : vector<16x1xf32> to vector<16x32xf32>
    %104 = arith.subf %98, %103 : vector<16x32xf32>
    %105 = arith.mulf %104, %104 : vector<16x32xf32>
    %cst_31 = arith.constant dense<0.000000e+00> : vector<16xf32>
    %106 = vector.multi_reduction <add>, %105, %cst_31 [1] : vector<16x32xf32> to vector<16xf32>
    %107 = vector.shape_cast %106 : vector<16xf32> to vector<16x1xf32>
    %cst_32 = arith.constant 3.200000e+01 : f32
    %108 = vector.broadcast %cst_32 : f32 to vector<16x1xf32>
    %109 = arith.divf %107, %108 : vector<16x1xf32>
    %110 = vector.broadcast %102 : vector<16x1xf32> to vector<16x32xf32>
    %111 = arith.subf %98, %110 : vector<16x32xf32>
    %cst_33 = arith.constant 9.99999974E-6 : f32
    %112 = vector.broadcast %cst_33 : f32 to vector<16x1xf32>
    %113 = arith.addf %109, %112 : vector<16x1xf32>
    %114 = math.rsqrt %113 : vector<16x1xf32>
    %115 = vector.broadcast %114 : vector<16x1xf32> to vector<16x32xf32>
    %116 = arith.mulf %111, %115 : vector<16x32xf32>
    %117 = vector.broadcast %11 : vector<1x32xf32> to vector<16x32xf32>
    %118 = arith.mulf %116, %117 : vector<16x32xf32>
    %119 = vector.broadcast %12 : vector<1x32xf32> to vector<16x32xf32>
    %120 = arith.addf %118, %119 : vector<16x32xf32>
    %cst_34 = arith.constant dense<0.000000e+00> : vector<16x32xf32>
    %121 = tpu.matmul %120, %6, %cst_34 {dimension_numbers = #tpu.dot_dimension_numbers<[1], [0], [0], [1], [0, 0, 1, 1], [], []>} : vector<16x32xf32>, vector<32x32xf32>, vector<16x32xf32> -> vector<16x32xf32>
    %122 = vector.broadcast %10 : vector<1x32xf32> to vector<16x32xf32>
    %123 = arith.addf %121, %122 : vector<16x32xf32>
    %cst_35 = arith.constant 0.000000e+00 : f32
    %124 = vector.broadcast %cst_35 : f32 to vector<16x32xf32>
    %125 = arith.maximumf %123, %124 : vector<16x32xf32>
    %126 = arith.addf %120, %125 : vector<16x32xf32>
    %cst_36 = arith.constant dense<0.000000e+00> : vector<16xf32>
    %127 = vector.multi_reduction <add>, %126, %cst_36 [1] : vector<16x32xf32> to vector<16xf32>
    %128 = vector.shape_cast %127 : vector<16xf32> to vector<16x1xf32>
    %cst_37 = arith.constant 3.200000e+01 : f32
    %129 = vector.broadcast %cst_37 : f32 to vector<16x1xf32>
    %130 = arith.divf %128, %129 : vector<16x1xf32>
    %131 = vector.broadcast %130 : vector<16x1xf32> to vector<16x32xf32>
    %132 = arith.subf %126, %131 : vector<16x32xf32>
    %133 = arith.mulf %132, %132 : vector<16x32xf32>
    %cst_38 = arith.constant dense<0.000000e+00> : vector<16xf32>
    %134 = vector.multi_reduction <add>, %133, %cst_38 [1] : vector<16x32xf32> to vector<16xf32>
    %135 = vector.shape_cast %134 : vector<16xf32> to vector<16x1xf32>
    %cst_39 = arith.constant 3.200000e+01 : f32
    %136 = vector.broadcast %cst_39 : f32 to vector<16x1xf32>
    %137 = arith.divf %135, %136 : vector<16x1xf32>
    %138 = vector.broadcast %130 : vector<16x1xf32> to vector<16x32xf32>
    %139 = arith.subf %126, %138 : vector<16x32xf32>
    %cst_40 = arith.constant 9.99999974E-6 : f32
    %140 = vector.broadcast %cst_40 : f32 to vector<16x1xf32>
    %141 = arith.addf %137, %140 : vector<16x1xf32>
    %142 = math.rsqrt %141 : vector<16x1xf32>
    %143 = vector.broadcast %142 : vector<16x1xf32> to vector<16x32xf32>
    %144 = arith.mulf %139, %143 : vector<16x32xf32>
    %145 = vector.broadcast %13 : vector<1x32xf32> to vector<16x32xf32>
    %146 = arith.mulf %144, %145 : vector<16x32xf32>
    %147 = vector.broadcast %14 : vector<1x32xf32> to vector<16x32xf32>
    %148 = arith.addf %146, %147 : vector<16x32xf32>
    %c0_41 = arith.constant 0 : index
    %c0_42 = arith.constant 0 : index
    %149 = vector.load %arg4[%c0_41, %c0_42] : memref<16x32xf32, #tpu.memory_space<vmem>>, vector<16x32xf32>
    tpu.vector_store %arg4[%c0_41, %c0_42], %148 {strides = array<i32>} : memref<16x32xf32, #tpu.memory_space<vmem>>, vector<16x32xf32>,
    return
  }
  func.func @transform_0(%arg0: i32) -> (i32, i32) {
    %c0_i32 = arith.constant 0 : i32
    %c0_i32_0 = arith.constant 0 : i32
    return %arg0, %c0_i32 : i32, i32
  }
  func.func @transform_1(%arg0: i32) -> (i32, i32, i32) {
    %c0_i32 = arith.constant 0 : i32
    %c0_i32_0 = arith.constant 0 : i32
    %c0_i32_1 = arith.constant 0 : i32
    %c0_i32_2 = arith.constant 0 : i32
    return %c0_i32, %c0_i32_0, %c0_i32_1 : i32, i32, i32
  }
  func.func @transform_2(%arg0: i32) -> (i32, i32) {
    %c0_i32 = arith.constant 0 : i32
    %c0_i32_0 = arith.constant 0 : i32
    %c0_i32_1 = arith.constant 0 : i32
    return %c0_i32, %c0_i32_0 : i32, i32
  }
  func.func @transform_3(%arg0: i32) -> (i32, i32) {
    %c0_i32 = arith.constant 0 : i32
    %c0_i32_0 = arith.constant 0 : i32
    return %arg0, %c0_i32 : i32, i32
  }
}

</mosaic_0001>

<bundles_post_ra>
// kernel: tpu_custom_call.1
= control target key start
LH: loop header
LB: loop body
LE: loop exit
PB: predicated region body
PF: predicated region fallthrough
CT: control target
= control target key end

     0   :  { %8 = vsyncpa [#allocation3], 0  ;;  %s2417_s0 = inlined_call_operand.hbm [shape: f32[16,96], index: 0, kind: input, shape index: {}]   ;;  %s2418_s1 = inlined_call_operand.hbm [shape: f32[2,96,96], index: 1, kind: input, shape index: {}]   ;;  %s2419_s2 = inlined_call_operand.hbm [shape: f32[4,96], index: 2, kind: input, shape index: {}]   ;;  %s2420_s3 = inlined_call_operand.hbm [shape: f32[16,32], index: 3, kind: output, shape index: {}]  }
   0x1   :  { %9 = vsyncpa [#allocation6], 0 }
   0x2   :  { %10 = vsyncpa [#allocation4], 0  ;;  %s2173_s12 = smov [#allocation5]   ;;  %s2174_s14 = smov [#allocation2]  }
   0x3   :  { %s28_s13 = sshll.u32 %s2173_s12, 4  ;;  %s16_s15 = sshll.u32 %s2174_s14, 4  ;;  %s29_s13 = int_to_ptr.vmem [resolvable:$true] %s28_s13  ;;  %s17_s15 = int_to_ptr.vmem [resolvable:$true] %s16_s15 }
   0x4   :  { %s2095_s16 = scalar_lea.vmem %s29_s13, 3072  ;;  %p2100_p1 = scmp.lt.s32.totalorder %s29_s13, %s29_s13 }
   0x5   :  { %p2096_p0 = scmp.ne.s32.totalorder %s29_s13, %s2095_s16  ;;  %p2101_p2 = scmp.lt.s32.totalorder %s2095_s16, %s2095_s16 }
   0x7   :  { %p2102_p3 = por %p2101_p2, %p2100_p1 }
   0x9   :  { %p2103_p4 = pnand %p2102_p3, %p2096_p0 }
   0xb   :  { %2106 = shalt.err (!%p2103_p4)
}
   0xc   :  { %s2175_s17 = smov 128   ;;  %s2176_s18 = smov 8  }
   0xd   :  { %34 = dma.hbm_to_vmem [thread:$0]  %s2418_s1, 3072, %s29_s13, [#allocation6], %s2175_s17, %s2175_s17, %s2176_s18  }
   0xe   :  { %s2115_s21 = scalar_lea.vmem %s17_s15, 256  ;;  %p2120_p6 = scmp.lt.s32.totalorder %s17_s15, %s17_s15 }
   0xf   :  { %p2116_p5 = scmp.ne.s32.totalorder %s17_s15, %s2115_s21  ;;  %p2121_p7 = scmp.lt.s32.totalorder %s2115_s21, %s2115_s21 }
  0x11   :  { %p2122_p8 = por %p2121_p7, %p2120_p6 }
  0x13   :  { %p2123_p9 = pnand %p2122_p8, %p2116_p5 }
  0x15   :  { %2126 = shalt.err (!%p2123_p9)
}
  0x16   :  { %22 = dma.hbm_to_vmem [thread:$0]  %s2417_s0, 256, %s17_s15, [#allocation3], %s2175_s17, %s2175_s17, %s2176_s18  }
  0x17   :  { %s2177_s24 = smov [#allocation7]  }
  0x18   :  { %s41_s25 = sshll.u32 %s2177_s24, 4  ;;  %s42_s25 = int_to_ptr.vmem [resolvable:$true] %s41_s25 }
  0x19   :  { %s2135_s26 = scalar_lea.vmem %s42_s25, 64  ;;  %p2140_p11 = scmp.lt.s32.totalorder %s42_s25, %s42_s25 }
  0x1a   :  { %p2136_p10 = scmp.ne.s32.totalorder %s42_s25, %s2135_s26  ;;  %p2141_p12 = scmp.lt.s32.totalorder %s2135_s26, %s2135_s26 }
  0x1c   :  { %p2142_p13 = por %p2141_p12, %p2140_p11 }
  0x1e   :  { %p2143_p0 = pnand %p2142_p13, %p2136_p10 }
  0x20   :  { %2146 = shalt.err (!%p2143_p0)
}
  0x21   :  { %44 = dma.hbm_to_vmem [thread:$0]  %s2419_s2, 64, %s42_s25, [#allocation6]  }
  0x22   :  { %2167 = dma.done.wait [#allocation3], 256  }
  0x23   :  { %2168 = vsyncadd [#allocation3], 4294967040 }
  0x24   :  { %2169 = dma.done.wait [#allocation6], 3136  }
  0x25   :  { %2170 = vsyncadd [#allocation6], 4294964160  ;;  %v67_v0 = vld [vmem:[#allocation5 + $0x58] sm:$0xff]  ;;  %v66_v1 = vld [vmem:[#allocation5 + $0x50] sm:$0xff]  ;;  %vm78_vm0 = vcmask 785408   ;;  %v2178_v14 = vmov 0.0   ;;  %v74_v15 = vlaneseq }
  0x26   :  { %1897 = vmatprep.subr.mxu0 %v67_v0  ;;  %v65_v2 = vld [vmem:[#allocation5 + $0x48] sm:$0xff]  ;;  %v64_v3 = vld [vmem:[#allocation5 + $0x40] sm:$0xff]  ;;  %v2229_v4 = vld [vmem:[#allocation2] sm:$0xff]  ;;  %1924 = vmatprep.subr.mxu1 %v2178_v14  ;;  %vm2179_vm1 = vmmov 0   ;;  %s2180_s0 = smov 96   ;;  %vm163_vm2 = vcmask 64512  }
  0x27   :  { %1898 = vmatpush3.msra.mxu0 %v67_v0  ;;  %1921 = vmatprep.mubr.msk.f32.mxu0 %vm78_vm0, %v2229_v4  ;;  %v63_v5 = vld [vmem:[#allocation5 + $0x38] sm:$0xff]  ;;  %v62_v6 = vld [vmem:[#allocation5 + $0x30] sm:$0xff]  ;;  %v61_v7 = vld [vmem:[#allocation5 + $0x28] sm:$0xff]  ;;  %v2239_v16 = vshrl.u32 %v74_v15, 7  ;;  %s2181_s2 = smov 64   ;;  %s2182_s28 = smov 88  }
  0x28   :  { %1899 = vmatprep.subr.mxu0 %v66_v1  ;;  %v60_v8 = vld [vmem:[#allocation5 + $0x20] sm:$0xff]  ;;  %v59_v9 = vld [vmem:[#allocation5 + $0x18] sm:$0xff]  ;;  %v58_v10 = vld [vmem:[#allocation5 + $0x10] sm:$0xff]  ;;  %1926 = vmatprep.mubr.msk.f32.mxu1 %vm2179_vm1, %v2178_v14  ;;  %s2183_s29 = smov 120   ;;  %s2184_s30 = smov 56   ;;  %vm1516_vm3 = vcmask 195584  }
  0x29   :  { %1900 = vmatpush3.msra.mxu0 %v66_v1  ;;  %v57_v11 = vld [vmem:[#allocation5 + $0x8] sm:$0xff]  ;;  %v56_v12 = vld [vmem:[#allocation5] sm:$0xff]  ;;  %v2233_v13 = vld [vmem:[#allocation2 + $0x8] sm:$0xff]  ;;  %v76_v17 = vsub.s32 0, %v2239_v16  ;;  %s2185_s4 = smov 80   ;;  %s2186_s5 = smov 112  }
  0x2a   :  { %1901 = vmatprep.subr.mxu0 %v65_v2  ;;  %v2246_v18 = vld [vmem:[#allocation7] sm:$0xf]  ;;  %s2187_s6 = smov 48   ;;  %s2188_s7 = smov 72   ;;  %vm1513_vm4 = vcmask 130048   ;;  %vm1523_vm5 = vcmask 261120  }
  0x2b   :  { %1902 = vmatpush3.msra.mxu0 %v65_v2  ;;  %v77_v20 = vrot.slane %v2246_v18, %v76_v17  ;;  %s2189_s8 = smov 104   ;;  %s2190_s9 = smov 40  }
  0x2c   :  { %1903 = vmatprep.subr.mxu0 %v64_v3  ;;  %s2191_s10 = smov 16   ;;  %s2192_s11 = smov 24  }
  0x2d   :  { %1904 = vmatpush3.msra.mxu0 %v64_v3  ;;  %s2193_s12 = smov [#allocation8]  }
  0x2e   :  { %1905 = vmatprep.subr.mxu0 %v63_v5  ;;  %s1796_s13 = sshll.u32 %s2193_s12, 4  ;;  %s1797_s13 = int_to_ptr.vmem [resolvable:$true] %s1796_s13 }
  0x2f   :  { %1906 = vmatpush3.msra.mxu0 %v63_v5  ;;  %s2147_s14 = scalar_lea.vmem %s1797_s13, 256  ;;  %p2152_p2 = scmp.lt.s32.totalorder %s1797_s13, %s1797_s13 }
  0x30   :  { %1907 = vmatprep.subr.mxu0 %v62_v6  ;;  %p2148_p1 = scmp.ne.s32.totalorder %s1797_s13, %s2147_s14  ;;  %p2153_p3 = scmp.lt.s32.totalorder %s2147_s14, %s2147_s14 }
  0x31   :  { %1908 = vmatpush3.msra.mxu0 %v62_v6 }
  0x32   :  { %1909 = vmatprep.subr.mxu0 %v61_v7  ;;  %p2154_p4 = por %p2153_p3, %p2152_p2 }
  0x33   :  { %1910 = vmatpush3.msra.mxu0 %v61_v7 }
  0x34   :  { %1911 = vmatprep.subr.mxu0 %v60_v8  ;;  %p2155_p5 = pnand %p2154_p4, %p2148_p1 }
  0x35   :  { %1912 = vmatpush3.msra.mxu0 %v60_v8 }
  0x36   :  { %1913 = vmatprep.subr.mxu0 %v59_v9 }
  0x37   :  { %1914 = vmatpush3.msra.mxu0 %v59_v9 }
  0x38   :  { %1915 = vmatprep.subr.mxu0 %v58_v10 }
  0x39   :  { %1916 = vmatpush3.msra.mxu0 %v58_v10 }
  0x3a   :  { %1917 = vmatprep.subr.mxu0 %v57_v11 }
  0x3b   :  { %1918 = vmatpush3.msra.mxu0 %v57_v11 }
  0x3c   :  { %1919 = vmatprep.subr.mxu0 %v56_v12 }
  0x3d   :  { %1920 = vmatpush3.msra.mxu0 %v56_v12 }
  0x3e   :  { %1922 = vmatmul.mubr.msk.f32.vlgmr.msra.gmra.mxu0 %vm78_vm0, %v2233_v13  ;;  %1954 = vmatprep.subr.mxu0 %v2178_v14 }
  0x3f   :  { %1956 = vmatprep.mubr.msk.f32.mxu0 %vm2179_vm1, %v2178_v14 }
  0xfe   :  { %v1923_v19 = vpop.f32.mrf.mxu0 }
  0xff   :  { %v2253_v23 = vadd.f32 %v1923_v19, %v77_v20 }
 0x100   :  { %v151_v21 = vpop.f32.mrf.mxu0 }
 0x101   :  { %v2249_v22 = vadd.f32 %v151_v21, %v77_v20 }
 0x103   :  { %161 = vrot.lane.b32.xlu0 %v2249_v22, %s2180_s0 }
 0x107   :  { %239 = vrot.lane.b32.xlu0 %v2253_v23, %s2180_s0 }
 0x175   :  { %v162_v24 = vpop.permute.xlu0 %161 }
 0x176   :  { %1925 = vmatpush3.xpose.msk.msra.mxu1 %vm163_vm2, %v162_v24 }
 0x177   :  { %1929 = vmatprep.subr.mxu1 %v2178_v14 }
 0x179   :  { %1927 = vmatmul.mubr.msk.f32.vlgmr.msra.gmra.mxu1 %vm163_vm2, %v2249_v22  ;;  %v240_v25 = vpop.permute.xlu0 %239 }
 0x17a   :  { %1930 = vmatpush3.xpose.msk.msra.mxu1 %vm163_vm2, %v240_v25  ;;  %1931 = vmatprep.mubr.msk.f32.mxu1 %vm2179_vm1, %v2178_v14 }
 0x17b   :  { %1934 = vmatprep.subr.mxu1 %v2178_v14 }
 0x17d   :  { %1932 = vmatmul.mubr.msk.f32.vlgmr.msra.gmra.mxu1 %vm163_vm2, %v2253_v23 }
 0x17e   :  { %1936 = vmatprep.mubr.msk.f32.mxu1 %vm2179_vm1, %v2178_v14 }
 0x239   :  { %v234_v26 = vpop.f32.mrf.mxu1 }
 0x23a   :  { %v315_v27 = vmul.f32 0.35355338, %v234_v26 }
 0x23b   :  { %v1928_v28 = vpop.f32.mrf.mxu1 }
 0x23c   :  { %v317_v29 = vsel %vm163_vm2, %v315_v27, -inf }
 0x23d   :  { %318 = vmax.xlane.f32.xlu1 %v317_v29  ;;  %v311_v30 = vpop.f32.mrf.mxu1 }
 0x23e   :  { %v316_v31 = vmul.f32 0.35355338, %v311_v30 }
 0x23f   :  { %v1933_v32 = vpop.f32.mrf.mxu1 }
 0x240   :  { %v320_v33 = vsel %vm163_vm2, %v316_v31, -inf }
 0x241   :  { %321 = vmax.xlane.f32.xlu1 %v320_v33 }
 0x252   :  { %339 = vrot.lane.b32.xlu1 %v2249_v22, %s2181_s2 }
 0x256   :  { %415 = vrot.lane.b32.xlu1 %v2253_v23, %s2181_s2 }
 0x25a   :  { %493 = vrot.lane.b32.xlu1 %v2249_v22, %s2182_s28 }
 0x25e   :  { %491 = vrot.lane.b32.xlu1 %v2249_v22, %s2183_s29 }
 0x2c6   :  { %v319_v34 = vpop.xlane.xlu1 %318 }
 0x2c7   :  { %v323_v35 = vsub.f32 %v315_v27, %v319_v34 }
 0x2c9   :  { %v325_v36 = vmul.f32 1.442695, %v323_v35 }
 0x2ca   :  { %v322_v37 = vpop.xlane.xlu1 %321 }
 0x2cb   :  { %2047 = vpow2.f32 %v325_v36  ;;  %v324_v38 = vsub.f32 %v316_v31, %v322_v37 }
 0x2cd   :  { %v327_v39 = vmul.f32 1.442695, %v324_v38 }
 0x2ce   :  { %v340_v40 = vpop.permute.xlu1 %339 }
 0x2cf   :  { %2049 = vpow2.f32 %v327_v39  ;;  %1935 = vmatpush3.msra.mxu1 %v340_v40 }
 0x2d0   :  { %1939 = vmatprep.subr.mxu1 %v2178_v14 }
 0x2d2   :  { %v416_v45 = vpop.permute.xlu1 %415 }
 0x2d6   :  { %v494_v46 = vpop.permute.xlu1 %493 }
 0x2d8   :  { %v2048_v41 = vpop.eup %2047 }
 0x2d9   :  { %v329_v42 = vsel %vm163_vm2, %v2048_v41, 0.0 }
 0x2da   :  { %330 = vadd.xlane.f32.xlu0 %v329_v42  ;;  %v492_v47 = vpop.permute.xlu1 %491 }
 0x2dc   :  { %v2050_v43 = vpop.eup %2049 }
 0x2dd   :  { %v332_v44 = vsel %vm163_vm2, %v2050_v43, 0.0 }
 0x2de   :  { %333 = vadd.xlane.f32.xlu1 %v332_v44 }
 0x2ef   :  { %569 = vrot.lane.b32.xlu1 %v2253_v23, %s2183_s29 }
 0x2f0   :  { %571 = vrot.lane.b32.xlu0 %v2253_v23, %s2182_s28 }
 0x363   :  { %v331_v48 = vpop.xlane.xlu0 %330 }
 0x364   :  { %2051 = vrcp.f32 %v331_v48 }
 0x367   :  { %v334_v49 = vpop.xlane.xlu1 %333  ;;  %v572_v54 = vpop.permute.xlu0 %571 }
 0x368   :  { %2053 = vrcp.f32 %v334_v49 }
 0x36b   :  { %v570_v55 = vpop.permute.xlu1 %569 }
 0x371   :  { %v2052_v50 = vpop.eup %2051 }
 0x372   :  { %v337_v51 = vmul.f32 %v2052_v50, %v2048_v41 }
 0x374   :  { %1937 = vmatmul.mubr.msk.f32.vlgmr.msra.gmra.mxu1 %vm163_vm2, %v337_v51 }
 0x375   :  { %v2054_v52 = vpop.eup %2053  ;;  %1940 = vmatpush3.msra.mxu1 %v416_v45  ;;  %1941 = vmatprep.mubr.msk.f32.mxu1 %vm2179_vm1, %v2178_v14 }
 0x376   :  { %1944 = vmatprep.subr.mxu1 %v2178_v14  ;;  %v338_v53 = vmul.f32 %v2054_v52, %v2050_v43 }
 0x378   :  { %1942 = vmatmul.mubr.msk.f32.vlgmr.msra.gmra.mxu1 %vm163_vm2, %v338_v53 }
 0x379   :  { %1945 = vmatpush3.xpose.msk.msra.mxu1 %vm163_vm2, %v494_v46  ;;  %1946 = vmatprep.mubr.msk.f32.mxu1 %vm2179_vm1, %v2178_v14 }
 0x37a   :  { %1949 = vmatprep.subr.mxu1 %v2178_v14 }
 0x37c   :  { %1947 = vmatmul.mubr.msk.f32.vlgmr.msra.gmra.mxu1 %vm163_vm2, %v492_v47 }
 0x37d   :  { %1950 = vmatpush3.xpose.msk.msra.mxu1 %vm163_vm2, %v572_v54  ;;  %1951 = vmatprep.mubr.msk.f32.mxu1 %vm2179_vm1, %v2178_v14 }
 0x37e   :  { %1959 = vmatprep.subr.mxu1 %v2178_v14 }
 0x380   :  { %1952 = vmatmul.mubr.msk.f32.vlgmr.msra.gmra.mxu1 %vm163_vm2, %v570_v55 }
 0x381   :  { %1961 = vmatprep.mubr.msk.f32.mxu1 %vm2179_vm1, %v2178_v14 }
 0x434   :  { %v2297_v56 = vpop.f32.mrf.mxu1 }
 0x436   :  { %v1938_v57 = vpop.f32.mrf.mxu1 }
 0x438   :  { %v2299_v58 = vpop.f32.mrf.mxu1 }
 0x43a   :  { %v1943_v59 = vpop.f32.mrf.mxu1 }
 0x43c   :  { %v565_v60 = vpop.f32.mrf.mxu1 }
 0x43d   :  { %v647_v61 = vmul.f32 0.35355338, %v565_v60 }
 0x43e   :  { %v1948_v62 = vpop.f32.mrf.mxu1 }
 0x43f   :  { %v649_v63 = vsel %vm163_vm2, %v647_v61, -inf }
 0x440   :  { %650 = vmax.xlane.f32.xlu1 %v649_v63  ;;  %v643_v0 = vpop.f32.mrf.mxu1 }
 0x441   :  { %v648_v1 = vmul.f32 0.35355338, %v643_v0 }
 0x442   :  { %v1953_v2 = vpop.f32.mrf.mxu1 }
 0x443   :  { %v652_v3 = vsel %vm163_vm2, %v648_v1, -inf }
 0x444   :  { %653 = vmax.xlane.f32.xlu0 %v652_v3 }
 0x451   :  { %671 = vrot.lane.b32.xlu1 %v2249_v22, %s2184_s30 }
 0x455   :  { %825 = vrot.lane.b32.xlu1 %v2249_v22, %s2185_s4 }
 0x459   :  { %903 = vrot.lane.b32.xlu1 %v2253_v23, %s2185_s4 }
 0x45a   :  { %747 = vrot.lane.b32.xlu0 %v2253_v23, %s2184_s30 }
 0x45e   :  { %823 = vrot.lane.b32.xlu0 %v2249_v22, %s2186_s5 }
 0x4c9   :  { %v651_v5 = vpop.xlane.xlu1 %650 }
 0x4ca   :  { %v655_v6 = vsub.f32 %v647_v61, %v651_v5 }
 0x4cc   :  { %v657_v7 = vmul.f32 1.442695, %v655_v6 }
 0x4cd   :  { %v672_v8 = vpop.permute.xlu1 %671  ;;  %v654_v9 = vpop.xlane.xlu0 %653 }
 0x4ce   :  { %2055 = vpow2.f32 %v657_v7  ;;  %v656_v10 = vsub.f32 %v648_v1, %v654_v9  ;;  %1955 = vmatpush3.msra.mxu0 %v672_v8 }
 0x4cf   :  { %1964 = vmatprep.subr.mxu0 %v2178_v14 }
 0x4d0   :  { %v659_v11 = vmul.f32 1.442695, %v656_v10 }
 0x4d1   :  { %v748_v12 = vpop.permute.xlu0 %747  ;;  %v826_v21 = vpop.permute.xlu1 %825 }
 0x4d2   :  { %2057 = vpow2.f32 %v659_v11  ;;  %1960 = vmatpush3.msra.mxu1 %v748_v12 }
 0x4d3   :  { %1969 = vmatprep.subr.mxu1 %v2178_v14 }
 0x4d5   :  { %v904_v24 = vpop.permute.xlu1 %903  ;;  %v824_v31 = vpop.permute.xlu0 %823 }
 0x4db   :  { %v2056_v15 = vpop.eup %2055 }
 0x4dc   :  { %v661_v17 = vsel %vm163_vm2, %v2056_v15, 0.0 }
 0x4dd   :  { %662 = vadd.xlane.f32.xlu1 %v661_v17 }
 0x4df   :  { %v2058_v19 = vpop.eup %2057 }
 0x4e0   :  { %v664_v20 = vsel %vm163_vm2, %v2058_v19, 0.0 }
 0x4e1   :  { %665 = vadd.xlane.f32.xlu1 %v664_v20 }
 0x4f2   :  { %901 = vrot.lane.b32.xlu1 %v2253_v23, %s2186_s5 }
 0x566   :  { %v663_v25 = vpop.xlane.xlu1 %662 }
 0x567   :  { %2059 = vrcp.f32 %v663_v25 }
 0x56a   :  { %v666_v26 = vpop.xlane.xlu1 %665 }
 0x56b   :  { %2061 = vrcp.f32 %v666_v26 }
 0x56e   :  { %v902_v32 = vpop.permute.xlu1 %901 }
 0x574   :  { %v2060_v27 = vpop.eup %2059 }
 0x575   :  { %v669_v28 = vmul.f32 %v2060_v27, %v2056_v15 }
 0x577   :  { %1957 = vmatmul.mubr.msk.f32.vlgmr.msra.gmra.mxu0 %vm163_vm2, %v669_v28 }
 0x578   :  { %v2062_v29 = vpop.eup %2061  ;;  %1965 = vmatpush3.xpose.msk.msra.mxu0 %vm163_vm2, %v826_v21  ;;  %1966 = vmatprep.mubr.msk.f32.mxu0 %vm2179_vm1, %v2178_v14 }
 0x579   :  { %v670_v30 = vmul.f32 %v2062_v29, %v2058_v19  ;;  %1974 = vmatprep.subr.mxu0 %v2178_v14 }
 0x57b   :  { %1962 = vmatmul.mubr.msk.f32.vlgmr.msra.gmra.mxu1 %vm163_vm2, %v670_v30  ;;  %1967 = vmatmul.mubr.msk.f32.vlgmr.msra.gmra.mxu0 %vm163_vm2, %v824_v31 }
 0x57c   :  { %1970 = vmatpush3.xpose.msk.msra.mxu1 %vm163_vm2, %v904_v24  ;;  %1971 = vmatprep.mubr.msk.f32.mxu1 %vm2179_vm1, %v2178_v14 }
 0x57d   :  { %1979 = vmatprep.subr.mxu1 %v2178_v14  ;;  %1976 = vmatprep.mubr.msk.f32.mxu0 %vm2179_vm1, %v2178_v14 }
 0x57f   :  { %1972 = vmatmul.mubr.msk.f32.vlgmr.msra.gmra.mxu1 %vm163_vm2, %v902_v32 }
 0x580   :  { %1981 = vmatprep.mubr.msk.f32.mxu1 %vm2179_vm1, %v2178_v14 }
 0x637   :  { %v2329_v33 = vpop.f32.mrf.mxu0 }
 0x639   :  { %v1958_v34 = vpop.f32.mrf.mxu0 }
 0x63b   :  { %v2331_v35 = vpop.f32.mrf.mxu1  ;;  %v897_v36 = vpop.f32.mrf.mxu0 }
 0x63c   :  { %v979_v37 = vmul.f32 0.35355338, %v897_v36 }
 0x63d   :  { %v1963_v38 = vpop.f32.mrf.mxu1  ;;  %v1968_v39 = vpop.f32.mrf.mxu0 }
 0x63e   :  { %v981_v40 = vsel %vm163_vm2, %v979_v37, -inf }
 0x63f   :  { %982 = vmax.xlane.f32.xlu0 %v981_v40  ;;  %v975_v41 = vpop.f32.mrf.mxu1  ;;  %v72_v40 = vld [vmem:[#allocation5 + $0x78] sm:$0xff] }
 0x640   :  { %v980_v42 = vmul.f32 0.35355338, %v975_v41  ;;  %v2373_v41 = vld [vmem:[#allocation5 + $0x70] sm:$0xff] }
 0x641   :  { %v1973_v43 = vpop.f32.mrf.mxu1 }
 0x642   :  { %v984_v44 = vsel %vm163_vm2, %v980_v42, -inf }
 0x643   :  { %985 = vmax.xlane.f32.xlu1 %v984_v44 }
 0x654   :  { %1003 = vrot.lane.b32.xlu1 %v2249_v22, %s2187_s6 }
 0x655   :  { %1079 = vrot.lane.b32.xlu0 %v2253_v23, %s2187_s6 }
 0x658   :  { %1157 = vrot.lane.b32.xlu1 %v2249_v22, %s2188_s7 }
 0x65c   :  { %1235 = vrot.lane.b32.xlu1 %v2253_v23, %s2188_s7 }
 0x660   :  { %1233 = vrot.lane.b32.xlu1 %v2253_v23, %s2189_s8 }
 0x6c8   :  { %v983_v45 = vpop.xlane.xlu0 %982 }
 0x6c9   :  { %v987_v46 = vsub.f32 %v979_v37, %v983_v45 }
 0x6cb   :  { %v989_v47 = vmul.f32 1.442695, %v987_v46 }
 0x6cc   :  { %v1080_v48 = vpop.permute.xlu0 %1079  ;;  %v986_v49 = vpop.xlane.xlu1 %985 }
 0x6cd   :  { %2063 = vpow2.f32 %v989_v47  ;;  %v988_v50 = vsub.f32 %v980_v42, %v986_v49  ;;  %1980 = vmatpush3.msra.mxu1 %v1080_v48  ;;  %v69_v42 = vld [vmem:[#allocation5 + $0x60] sm:$0xff] }
 0x6ce   :  { %1989 = vmatprep.subr.mxu1 %v2178_v14 }
 0x6cf   :  { %v991_v51 = vmul.f32 1.442695, %v988_v50 }
 0x6d0   :  { %v1004_v52 = vpop.permute.xlu1 %1003 }
 0x6d1   :  { %2065 = vpow2.f32 %v991_v51  ;;  %1975 = vmatpush3.msra.mxu0 %v1004_v52 }
 0x6d2   :  { %1984 = vmatprep.subr.mxu0 %v2178_v14 }
 0x6d4   :  { %v1158_v61 = vpop.permute.xlu1 %1157 }
 0x6d8   :  { %v1236_v1 = vpop.permute.xlu1 %1235 }
 0x6da   :  { %v2064_v53 = vpop.eup %2063 }
 0x6db   :  { %v993_v54 = vsel %vm163_vm2, %v2064_v53, 0.0 }
 0x6dc   :  { %994 = vadd.xlane.f32.xlu0 %v993_v54  ;;  %v1234_v5 = vpop.permute.xlu1 %1233 }
 0x6de   :  { %v2066_v55 = vpop.eup %2065 }
 0x6df   :  { %v996_v57 = vsel %vm163_vm2, %v2066_v55, 0.0 }
 0x6e0   :  { %997 = vadd.xlane.f32.xlu0 %v996_v57 }
 0x6f6   :  { %1155 = vrot.lane.b32.xlu0 %v2249_v22, %s2189_s8 }
 0x765   :  { %v995_v59 = vpop.xlane.xlu0 %994 }
 0x766   :  { %2067 = vrcp.f32 %v995_v59 }
 0x769   :  { %v998_v60 = vpop.xlane.xlu0 %997 }
 0x76a   :  { %2069 = vrcp.f32 %v998_v60 }
 0x76d   :  { %v1156_v3 = vpop.permute.xlu0 %1155 }
 0x773   :  { %v2068_v62 = vpop.eup %2067 }
 0x774   :  { %v1001_v63 = vmul.f32 %v2068_v62, %v2064_v53 }
 0x776   :  { %1977 = vmatmul.mubr.msk.f32.vlgmr.msra.gmra.mxu0 %vm163_vm2, %v1001_v63 }
 0x777   :  { %v2070_v0 = vpop.eup %2069  ;;  %1985 = vmatpush3.xpose.msk.msra.mxu0 %vm163_vm2, %v1158_v61  ;;  %1986 = vmatprep.mubr.msk.f32.mxu0 %vm2179_vm1, %v2178_v14  ;;  %v1521_v61 = vsub.s32 1, %v2239_v16 }
 0x778   :  { %v1002_v2 = vmul.f32 %v2070_v0, %v2066_v55  ;;  %1994 = vmatprep.subr.mxu0 %v2178_v14 }
 0x77a   :  { %1982 = vmatmul.mubr.msk.f32.vlgmr.msra.gmra.mxu1 %vm163_vm2, %v1002_v2  ;;  %1987 = vmatmul.mubr.msk.f32.vlgmr.msra.gmra.mxu0 %vm163_vm2, %v1156_v3 }
 0x77b   :  { %1990 = vmatpush3.xpose.msk.msra.mxu1 %vm163_vm2, %v1236_v1  ;;  %1991 = vmatprep.mubr.msk.f32.mxu1 %vm2179_vm1, %v2178_v14 }
 0x77c   :  { %1999 = vmatprep.subr.mxu1 %v2178_v14  ;;  %1996 = vmatprep.mubr.msk.f32.mxu0 %vm2179_vm1, %v2178_v14 }
 0x77e   :  { %1992 = vmatmul.mubr.msk.f32.vlgmr.msra.gmra.mxu1 %vm163_vm2, %v1234_v5 }
 0x77f   :  { %2001 = vmatprep.mubr.msk.f32.mxu1 %vm2179_vm1, %v2178_v14 }
 0x836   :  { %v1075_v6 = vpop.f32.mrf.mxu0 }
 0x838   :  { %v1978_v7 = vpop.f32.mrf.mxu0 }
 0x83a   :  { %v1151_v8 = vpop.f32.mrf.mxu1  ;;  %v1229_v9 = vpop.f32.mrf.mxu0 }
 0x83b   :  { %v1311_v10 = vmul.f32 0.35355338, %v1229_v9 }
 0x83c   :  { %v1983_v11 = vpop.f32.mrf.mxu1  ;;  %v1988_v12 = vpop.f32.mrf.mxu0 }
 0x83d   :  { %v1313_v15 = vsel %vm163_vm2, %v1311_v10, -inf }
 0x83e   :  { %1314 = vmax.xlane.f32.xlu0 %v1313_v15  ;;  %v1307_v17 = vpop.f32.mrf.mxu1 }
 0x83f   :  { %v1312_v19 = vmul.f32 0.35355338, %v1307_v17 }
 0x840   :  { %v1993_v20 = vpop.f32.mrf.mxu1 }
 0x841   :  { %v1316_v21 = vsel %vm163_vm2, %v1312_v19, -inf }
 0x842   :  { %1317 = vmax.xlane.f32.xlu1 %v1316_v21 }
 0x853   :  { %1335 = vrot.lane.b32.xlu1 %v2249_v22, %s2190_s9 }
 0x857   :  { %1489 = vrot.lane.b32.xlu1 %v2329_v33, %s2176_s18 }
 0x85b   :  { %1491 = vrot.lane.b32.xlu1 %v2331_v35, %s2176_s18 }
 0x85f   :  { %1499 = vrot.lane.b32.xlu1 %v1151_v8, %s2191_s10 }
 0x8c7   :  { %v1315_v14 = vpop.xlane.xlu0 %1314 }
 0x8c8   :  { %v1319_v24 = vsub.f32 %v1311_v10, %v1315_v14 }
 0x8ca   :  { %v1321_v25 = vmul.f32 1.442695, %v1319_v24 }
 0x8cb   :  { %v1318_v26 = vpop.xlane.xlu1 %1317 }
 0x8cc   :  { %2071 = vpow2.f32 %v1321_v25  ;;  %v1320_v27 = vsub.f32 %v1312_v19, %v1318_v26 }
 0x8ce   :  { %v1323_v28 = vmul.f32 1.442695, %v1320_v27 }
 0x8cf   :  { %v1336_v29 = vpop.permute.xlu1 %1335 }
 0x8d0   :  { %2073 = vpow2.f32 %v1323_v28  ;;  %1995 = vmatpush3.msra.mxu0 %v1336_v29 }
 0x8d1   :  { %2004 = vmatprep.subr.mxu0 %v72_v40 }
 0x8d3   :  { %v1490_v47 = vpop.permute.xlu1 %1489 }
 0x8d4   :  { %v1511_v50 = vsel %vm163_vm2, %v2297_v56, %v1490_v47  ;;  %v1522_v56 = vrot.slane %v2246_v18, %v1521_v61 }
 0x8d7   :  { %v1492_v48 = vpop.permute.xlu1 %1491 }
 0x8d8   :  { %v1512_v55 = vsel %vm163_vm2, %v2299_v58, %v1492_v48 }
 0x8d9   :  { %v2072_v30 = vpop.eup %2071 }
 0x8da   :  { %v1325_v22 = vsel %vm163_vm2, %v2072_v30, 0.0 }
 0x8db   :  { %1326 = vadd.xlane.f32.xlu0 %v1325_v22  ;;  %v1500_v51 = vpop.permute.xlu1 %1499 }
 0x8dc   :  { %v1515_v57 = vsel %vm1513_vm4, %v1512_v55, %v1500_v51 }
 0x8dd   :  { %v2074_v31 = vpop.eup %2073 }
 0x8de   :  { %v1328_v32 = vsel %vm163_vm2, %v2074_v31, 0.0 }
 0x8df   :  { %1329 = vadd.xlane.f32.xlu0 %v1328_v32 }
 0x8f5   :  { %1411 = vrot.lane.b32.xlu0 %v2253_v23, %s2190_s9  ;;  %v70_v23 = vld [vmem:[#allocation5 + $0x68] sm:$0xff] }
 0x8f9   :  { %1497 = vrot.lane.b32.xlu0 %v1075_v6, %s2191_s10  ;;  %v1636_v6 = vsub.s32 2, %v2239_v16 }
 0x8fb   :  { %v1637_v7 = vrot.slane %v2246_v18, %v1636_v6 }
 0x964   :  { %v1327_v33 = vpop.xlane.xlu0 %1326 }
 0x965   :  { %2075 = vrcp.f32 %v1327_v33 }
 0x968   :  { %v1330_v34 = vpop.xlane.xlu0 %1329 }
 0x969   :  { %2077 = vrcp.f32 %v1330_v34 }
 0x96c   :  { %v1412_v35 = vpop.permute.xlu0 %1411 }
 0x96d   :  { %2000 = vmatpush3.msra.mxu1 %v1412_v35 }
 0x970   :  { %v1498_v49 = vpop.permute.xlu0 %1497 }
 0x971   :  { %v1514_v52 = vsel %vm1513_vm4, %v1511_v50, %v1498_v49  ;;  %v1779_v49 = vsub.s32 3, %v2239_v16 }
 0x972   :  { %v2076_v36 = vpop.eup %2075 }
 0x973   :  { %v1333_v37 = vmul.f32 %v2076_v36, %v2072_v30  ;;  %v1780_v50 = vrot.slane %v2246_v18, %v1779_v49 }
 0x975   :  { %1997 = vmatmul.mubr.msk.f32.vlgmr.msra.gmra.mxu0 %vm163_vm2, %v1333_v37 }
 0x976   :  { %v2078_v38 = vpop.eup %2077  ;;  %2005 = vmatpush3.msra.mxu0 %v72_v40 }
 0x977   :  { %v1334_v39 = vmul.f32 %v2078_v38, %v2074_v31  ;;  %2006 = vmatprep.subr.mxu0 %v2373_v41 }
 0x978   :  { %2007 = vmatpush3.msra.mxu0 %v2373_v41 }
 0x979   :  { %2002 = vmatmul.mubr.msk.f32.vlgmr.msra.gmra.mxu1 %vm163_vm2, %v1334_v39  ;;  %2008 = vmatprep.subr.mxu0 %v70_v23 }
 0x97a   :  { %2009 = vmatpush3.msra.mxu0 %v70_v23 }
 0x97b   :  { %2010 = vmatprep.subr.mxu0 %v69_v42 }
 0x97c   :  { %2011 = vmatpush3.msra.mxu0 %v69_v42 }
 0xa35   :  { %v1407_v43 = vpop.f32.mrf.mxu0 }
 0xa36   :  { %1505 = vrot.lane.b32.xlu0 %v1407_v43, %s2192_s11 }
 0xa37   :  { %v1998_v44 = vpop.f32.mrf.mxu0 }
 0xa39   :  { %v1483_v45 = vpop.f32.mrf.mxu1 }
 0xa3a   :  { %1507 = vrot.lane.b32.xlu1 %v1483_v45, %s2192_s11 }
 0xa3b   :  { %v2003_v46 = vpop.f32.mrf.mxu1 }
 0xaa8   :  { %v1506_v53 = vpop.permute.xlu0 %1505 }
 0xaa9   :  { %v1517_v54 = vsel %vm1516_vm3, %v1514_v52, %v1506_v53 }
 0xaaa   :  { %2012 = vmatprep.mubr.msk.f32.mxu0 %vm1523_vm5, %v1517_v54 }
 0xaac   :  { %v1508_v59 = vpop.permute.xlu1 %1507 }
 0xaad   :  { %v1518_v60 = vsel %vm1516_vm3, %v1515_v57, %v1508_v59 }
 0xaae   :  { %2013 = vmatmul.mubr.msk.f32.vlgmr.msra.gmra.mxu0 %vm1523_vm5, %v1518_v60 }
 0xb6e   :  { %v2014_v62 = vpop.f32.mrf.mxu0 }
 0xb6f   :  { %v1602_v63 = vadd.f32 %v2014_v62, %v1522_v56 }
 0xb70   :  { %v1596_v0 = vpop.f32.mrf.mxu0 }
 0xb71   :  { %v1597_v1 = vadd.f32 %v1596_v0, %v1522_v56  ;;  %v1606_v2 = vadd.f32 %v1602_v63, %v2233_v13 }
 0xb73   :  { %v1610_v3 = vsel %vm1523_vm5, %v1606_v2, 0.0  ;;  %v1605_v5 = vadd.f32 %v1597_v1, %v2229_v4 }
 0xb74   :  { %1611 = vadd.xlane.f32.xlu1 %v1610_v3 }
 0xb75   :  { %v1607_v58 = vsel %vm1523_vm5, %v1605_v5, 0.0 }
 0xb76   :  { %1608 = vadd.xlane.f32.xlu0 %v1607_v58 }
 0xb85   :  { %1656 = vrot.lane.b32.xlu1 %v72_v40, %s2180_s0 }
 0xb89   :  { %1652 = vrot.lane.b32.xlu1 %v70_v23, %s2180_s0 }
 0xb8d   :  { %1641 = vrot.lane.b32.xlu1 %v1637_v7, %s2180_s0 }
 0xb91   :  { %1663 = vrot.lane.b32.xlu1 %v1522_v56, %s2180_s0 }
 0xbfd   :  { %v1612_v13 = vpop.xlane.xlu1 %1611 }
 0xbfe   :  { %v1615_v8 = vmul.f32 0.03125, %v1612_v13 }
 0xbff   :  { %v1609_v9 = vpop.xlane.xlu0 %1608 }
 0xc00   :  { %v1617_v4 = vsub.f32 %v1606_v2, %v1615_v8  ;;  %v1614_v10 = vmul.f32 0.03125, %v1609_v9 }
 0xc01   :  { %v1657_v20 = vpop.permute.xlu1 %1656 }
 0xc02   :  { %v1616_v11 = vsub.f32 %v1605_v5, %v1614_v10  ;;  %v1619_v12 = vmul.f32 %v1617_v4, %v1617_v4  ;;  %2015 = vmatprep.subr.mxu1 %v1657_v20 }
 0xc03   :  { %2016 = vmatpush3.msra.mxu1 %v1657_v20 }
 0xc04   :  { %v1623_v15 = vsel %vm1523_vm5, %v1619_v12, 0.0  ;;  %v1618_v17 = vmul.f32 %v1616_v11, %v1616_v11 }
 0xc05   :  { %1624 = vadd.xlane.f32.xlu0 %v1623_v15  ;;  %v1653_v29 = vpop.permute.xlu1 %1652 }
 0xc06   :  { %v1620_v19 = vsel %vm1523_vm5, %v1618_v17, 0.0 }
 0xc09   :  { %1621 = vadd.xlane.f32.xlu0 %v1620_v19  ;;  %v1642_v35 = vpop.permute.xlu1 %1641 }
 0xc0d   :  { %v1664_v39 = vpop.permute.xlu1 %1663 }
 0xc1f   :  { %1654 = vrot.lane.b32.xlu0 %v2373_v41, %s2180_s0 }
 0xc23   :  { %1650 = vrot.lane.b32.xlu0 %v69_v42, %s2180_s0 }
 0xc8e   :  { %v1625_v21 = vpop.xlane.xlu0 %1624 }
 0xc8f   :  { %v1627_v14 = vmul.f32 0.03125, %v1625_v21 }
 0xc91   :  { %v1629_v24 = vadd.f32 1e-05, %v1627_v14 }
 0xc92   :  { %v1622_v25 = vpop.xlane.xlu0 %1621 }
 0xc93   :  { %2079 = vrsqrt.f32 %v1629_v24  ;;  %v1626_v26 = vmul.f32 0.03125, %v1622_v25 }
 0xc95   :  { %v1628_v27 = vadd.f32 1e-05, %v1626_v26 }
 0xc96   :  { %v1655_v28 = vpop.permute.xlu0 %1654 }
 0xc97   :  { %2081 = vrsqrt.f32 %v1628_v27  ;;  %2017 = vmatprep.subr.mxu1 %v1655_v28 }
 0xc98   :  { %2018 = vmatpush3.msra.mxu1 %v1655_v28 }
 0xc99   :  { %2019 = vmatprep.subr.mxu1 %v1653_v29 }
 0xc9a   :  { %2020 = vmatpush3.msra.mxu1 %v1653_v29  ;;  %v1651_v30 = vpop.permute.xlu0 %1650 }
 0xc9b   :  { %2021 = vmatprep.subr.mxu1 %v1651_v30 }
 0xc9c   :  { %2022 = vmatpush3.msra.mxu1 %v1651_v30 }
 0xca0   :  { %v2080_v22 = vpop.eup %2079 }
 0xca1   :  { %v1633_v31 = vmul.f32 %v2080_v22, %v1617_v4 }
 0xca3   :  { %v1639_v34 = vmul.f32 %v1637_v7, %v1633_v31 }
 0xca4   :  { %v2082_v32 = vpop.eup %2081 }
 0xca5   :  { %v1632_v33 = vmul.f32 %v2082_v32, %v1616_v11  ;;  %v1645_v38 = vadd.f32 %v1642_v35, %v1639_v34 }
 0xca7   :  { %v1638_v36 = vmul.f32 %v1637_v7, %v1632_v33 }
 0xca9   :  { %v1644_v37 = vadd.f32 %v1642_v35, %v1638_v36 }
 0xcab   :  { %2023 = vmatprep.mubr.msk.f32.mxu1 %vm1523_vm5, %v1644_v37 }
 0xcac   :  { %2024 = vmatmul.mubr.msk.f32.vlgmr.msra.gmra.mxu1 %vm1523_vm5, %v1645_v38 }
 0xd6c   :  { %v2025_v40 = vpop.f32.mrf.mxu1 }
 0xd6d   :  { %v1744_v41 = vadd.f32 %v2025_v40, %v1664_v39 }
 0xd6e   :  { %v1738_v23 = vpop.f32.mrf.mxu1 }
 0xd6f   :  { %v1748_v42 = vmax.f32 %v1744_v41, 0.0  ;;  %v1739_v43 = vadd.f32 %v1738_v23, %v1664_v39 }
 0xd71   :  { %v1747_v44 = vmax.f32 %v1739_v43, 0.0  ;;  %v1750_v45 = vadd.f32 %v1748_v42, %v1645_v38 }
 0xd73   :  { %v1754_v46 = vsel %vm1523_vm5, %v1750_v45, 0.0  ;;  %v1749_v47 = vadd.f32 %v1747_v44, %v1644_v37 }
 0xd74   :  { %1755 = vadd.xlane.f32.xlu1 %v1754_v46 }
 0xd75   :  { %v1751_v48 = vsel %vm1523_vm5, %v1749_v47, 0.0 }
 0xd76   :  { %1752 = vadd.xlane.f32.xlu0 %v1751_v48 }
 0xd85   :  { %1784 = vrot.lane.b32.xlu1 %v1780_v50, %s2180_s0 }
 0xdfd   :  { %v1756_v51 = vpop.xlane.xlu1 %1755 }
 0xdfe   :  { %v1758_v52 = vmul.f32 0.03125, %v1756_v51 }
 0xdff   :  { %v1753_v53 = vpop.xlane.xlu0 %1752 }
 0xe00   :  { %v1757_v54 = vmul.f32 0.03125, %v1753_v53  ;;  %v1760_v55 = vsub.f32 %v1750_v45, %v1758_v52 }
 0xe01   :  { %v1785_v5 = vpop.permute.xlu1 %1784 }
 0xe02   :  { %v1759_v57 = vsub.f32 %v1749_v47, %v1757_v54  ;;  %v1762_v61 = vmul.f32 %v1760_v55, %v1760_v55 }
 0xe04   :  { %v1761_v59 = vmul.f32 %v1759_v57, %v1759_v57  ;;  %v1766_v56 = vsel %vm1523_vm5, %v1762_v61, 0.0 }
 0xe06   :  { %v1763_v60 = vsel %vm1523_vm5, %v1761_v59, 0.0 }
 0xe07   :  { %1764 = vadd.xlane.f32.xlu0 %v1763_v60 }
 0xe0b   :  { %1767 = vadd.xlane.f32.xlu0 %v1766_v56 }
 0xe90   :  { %v1765_v62 = vpop.xlane.xlu0 %1764 }
 0xe91   :  { %v1769_v16 = vmul.f32 0.03125, %v1765_v62 }
 0xe93   :  { %v1771_v63 = vadd.f32 1e-05, %v1769_v16 }
 0xe94   :  { %v1768_v18 = vpop.xlane.xlu0 %1767 }
 0xe95   :  { %2083 = vrsqrt.f32 %v1771_v63  ;;  %v1770_v0 = vmul.f32 0.03125, %v1768_v18 }
 0xe97   :  { %v1772_v1 = vadd.f32 1e-05, %v1770_v0 }
 0xe99   :  { %2085 = vrsqrt.f32 %v1772_v1 }
 0xea2   :  { %v2084_v2 = vpop.eup %2083 }
 0xea3   :  { %v1775_v3 = vmul.f32 %v2084_v2, %v1759_v57 }
 0xea5   :  { %v1781_v58 = vmul.f32 %v1780_v50, %v1775_v3 }
 0xea6   :  { %v2086_v6 = vpop.eup %2085 }
 0xea7   :  { %v1776_v7 = vmul.f32 %v2086_v6, %v1760_v55  ;;  %v1787_v13 = vadd.f32 %v1785_v5, %v1781_v58 }
 0xea9   :  { %v1782_v8 = vmul.f32 %v1780_v50, %v1776_v7  ;;  %1789 = vst.msk [vmem:[#allocation8] sm:$0xff] %vm1523_vm5, %v1787_v13 }
 0xeab   :  { %v1788_v9 = vadd.f32 %v1785_v5, %v1782_v8 }
 0xead   :  { %1790 = vst.msk [vmem:[#allocation8 + $0x8] sm:$0xff] %vm1523_vm5, %v1788_v9 }
 0xeae   :  { %2158 = shalt.err (!%p2155_p5)
}
 0xeaf   :  { %1802 = dma.vmem_to_hbm [thread:$0]  %s1797_s13, 256, %s2420_s3, [#allocation4], %s2175_s17, %s2175_s17, %s2176_s18  }
 0xeb0   :  { %2171 = dma.done.wait [#allocation4], 256  }
 0xeb1   :  { %2172 = vsyncadd [#allocation4], 4294967040 }
 0xeb2   :  { %1806 = vsyncpa [#allocation3], 1 }
 0xeb3   :  { %1807 = vsyncpa [#allocation6], 1 }
 0xeb4   :  { %1808 = vsyncpa [#allocation4], 1 }

</bundles_post_ra>
